<compile_context>
chip_gen: v7x
topology: tpu7x:2x2x1
jax: 0.10.0
libtpu: 0.0.40
codegen_flags: <defaults>
</compile_context>

<pallas_src>
import functools

import jax
import jax.numpy as jnp
from jax.experimental import pallas as pl
from jax.experimental.pallas import tpu as pltpu


def _round_up(x, m):
    return (x + m - 1) // m * m


def _lane_layout(H):
    """Return (H_lane, P): H is padded to H_lane and P rows share 128 lanes."""
    if H >= 128:
        return _round_up(H, 128), 1
    H_lane = pl.next_power_of_2(H)       # power of two => divides 128
    return H_lane, 128 // H_lane


def _ffn_kernel(x_ref, w1t_ref, b1_ref, w2t_ref, b2_ref, o_ref):
    # x_ref: (tile, L) packed row tile; weights (L, L) block-diag; biases (1, L).
    x = x_ref[...]
    h = jnp.dot(x, w1t_ref[...], preferred_element_type=jnp.float32)
    h = h + b1_ref[...].astype(jnp.float32)
    h = jnp.maximum(h, 0.0)                      # ReLU
    # Cast back to the storage dtype so the second matmul runs at full MXU
    # rate when inputs/weights are bf16; accumulation stays f32.
    h = h.astype(x_ref.dtype)
    # TODO(synk): dropout1/dropout2 are identity here (eval-mode semantics);
    # training-mode dropout would use pltpu.prng_seed / pltpu.prng_random_bits.
    y = jnp.dot(h, w2t_ref[...], preferred_element_type=jnp.float32)
    y = y + b2_ref[...].astype(jnp.float32)
    o_ref[...] = (y + x.astype(jnp.float32)).astype(o_ref.dtype)  # residual


def pack_ffn_params(w1, b1, w2, b2, dtype=jnp.float32):
    """Pre-transpose / pad / block-diagonalize conv1d(k=1) params (run once).

    w1/w2: (H, H) as (out_channels, in_channels); b1/b2: (H,).
    Returns (L, L) weights (so y = x_packed @ W) and (1, L) biases, where
    L = P * H_lane and P rows of hidden size H share one 128-lane row.
    """
    H = w1.shape[0]
    H_lane, P = _lane_layout(H)
    L = H_lane * P

    def pack_w(w):
        wt = jnp.pad(jnp.transpose(w), ((0, H_lane - H), (0, H_lane - H)))
        # Block-diagonal: each packed sub-row multiplies its own weight copy.
        return jnp.kron(jnp.eye(P, dtype=wt.dtype), wt).astype(dtype)

    def pack_b(b):
        return jnp.tile(jnp.pad(b, (0, H_lane - H)), P).reshape(1, L).astype(dtype)

    return pack_w(w1), pack_b(b1), pack_w(w2), pack_b(b2)


@functools.partial(jax.jit, static_argnames=("tile_m",))
def pointwise_feed_forward(inputs, w1_bd, b1_t, w2_bd, b2_t, tile_m=1024):
    """inputs: (B, S, H); packed params from pack_ffn_params (hot path)."""
    B, S, H = inputs.shape
    L = w1_bd.shape[0]
    H_lane, P = _lane_layout(H)
    assert H_lane * P == L, "packed params do not match input hidden size"

    dt = inputs.dtype
    itemsize = jnp.dtype(dt).itemsize
    M = B * S

    # --- row packing: P positions of width H_lane share one 128-lane row ---
    Mp = pl.cdiv(M, P)                                   # packed rows
    row_gran = 8 if itemsize >= 4 else 16                # sublane granularity
    tile = min(tile_m, _round_up(Mp, row_gran))
    # Keep >= 2 grid steps when possible so the 'parallel' axis can shard
    # across v7x's two TensorCores.
    if _round_up(Mp, row_gran) // tile < 2 and Mp >= 2 * row_gran:
        tile = _round_up(pl.cdiv(Mp, 2), row_gran)
    Mp_pad = _round_up(Mp, tile)
    M_total = Mp_pad * P

    x = inputs.reshape(M, H)
    if M_total != M or H_lane != H:
        # Only the small remainder rows/lanes get padded; for typical shapes
        # (H a power of two, M a multiple of P*tile) this branch is skipped
        # and the packing below is a zero-copy reshape (no extra HBM pass).
        x = jnp.pad(x, ((0, M_total - M), (0, H_lane - H)))
    x = x.reshape(Mp_pad, L)

    # No-op for matching dtypes; enables bf16 activation streaming if desired.
    w1_bd = w1_bd.astype(dt)
    w2_bd = w2_bd.astype(dt)
    b1_t = b1_t.astype(dt)
    b2_t = b2_t.astype(dt)

    grid = (Mp_pad // tile,)

    # VMEM: double-buffered in/out tiles + weights/biases + f32 temporaries.
    vmem_need = (
        2 * 2 * tile * L * itemsize
        + 2 * (2 * L * L + 2 * L) * itemsize
        + 2 * tile * L * 4
    )
    vmem_limit = int(min(32 << 20, max(4 << 20, 2 * vmem_need)))

    cost = pl.CostEstimate(
        flops=4 * Mp_pad * L * L,                       # two (Mp,L)x(L,L) matmuls
        transcendentals=0,
        bytes_accessed=(2 * Mp_pad * L + 2 * L * L + 2 * L) * itemsize,
    )

    out = pl.pallas_call(
        _ffn_kernel,
        out_shape=jax.ShapeDtypeStruct((Mp_pad, L), dt),
        grid_spec=pltpu.PrefetchScalarGridSpec(
            num_scalar_prefetch=0,
            grid=grid,
            in_specs=[
                pl.BlockSpec((tile, L), lambda i: (i, 0)),   # packed activations
                pl.BlockSpec((L, L), lambda i: (0, 0)),      # w1 block-diag (resident)
                pl.BlockSpec((1, L), lambda i: (0, 0)),      # b1 tiled
                pl.BlockSpec((L, L), lambda i: (0, 0)),      # w2 block-diag (resident)
                pl.BlockSpec((1, L), lambda i: (0, 0)),      # b2 tiled
            ],
            out_specs=pl.BlockSpec((tile, L), lambda i: (i, 0)),
        ),
        compiler_params=pltpu.CompilerParams(
            dimension_semantics=("parallel",),
            vmem_limit_bytes=vmem_limit,
        ),
        cost_estimate=cost,
    )(x, w1_bd, b1_t, w2_bd, b2_t)

    out = out.reshape(M_total, H_lane)
    if M_total != M or H_lane != H:
        out = out[:M, :H]
    return out.reshape(B, S, H)


def _reference(inputs, w1, b1, w2, b2):
    # Pure-JAX reference mirroring the PyTorch forward (eval mode).
    h = jnp.einsum("bsh,oh->bso", inputs, w1) + b1
    h = jnp.maximum(h, 0.0)
    y = jnp.einsum("bsh,oh->bso", h, w2) + b2
    return y + inputs


if __name__ == "__main__":
    B, S, H = 2, 8, 32            # batch, seq, hidden_units
    key = jax.random.PRNGKey(0)
    k_x, k_w1, k_b1, k_w2, k_b2 = jax.random.split(key, 5)

    x = jax.random.normal(k_x, (B, S, H), dtype=jnp.float32)
    # Conv1d(hidden, hidden, kernel_size=1) weights: (out, in, 1) -> squeeze -> (out, in)
    bound = 1.0 / (H ** 0.5)
    w1 = jax.random.uniform(k_w1, (H, H), minval=-bound, maxval=bound, dtype=jnp.float32)
    b1 = jax.random.uniform(k_b1, (H,), minval=-bound, maxval=bound, dtype=jnp.float32)
    w2 = jax.random.uniform(k_w2, (H, H), minval=-bound, maxval=bound, dtype=jnp.float32)
    b2 = jax.random.uniform(k_b2, (H,), minval=-bound, maxval=bound, dtype=jnp.float32)

    # Weight prep hoisted out of the hot path (run once, reuse every forward).
    packed = pack_ffn_params(w1, b1, w2, b2, dtype=jnp.float32)
    packed = jax.block_until_ready(packed)

    out = pointwise_feed_forward(x, *packed)
    out = jax.block_until_ready(out)

    ref = _reference(x, w1, b1, w2, b2)
    assert out.shape == (B, S, H)
    assert jnp.allclose(out, ref, atol=1e-5, rtol=1e-5), "mismatch vs reference"
    print("KERNEL_OK")
</pallas_src>

<mosaic_0001>
module attributes {stable_mosaic.version = 11 : i64} {
  func.func @_ffn_kernel(%arg0: i32, %arg1: memref<8x128xf32, #tpu.memory_space<vmem>>, %arg2: memref<128x128xf32, #tpu.memory_space<vmem>>, %arg3: memref<1x128xf32, #tpu.memory_space<vmem>>, %arg4: memref<128x128xf32, #tpu.memory_space<vmem>>, %arg5: memref<1x128xf32, #tpu.memory_space<vmem>>, %arg6: memref<8x128xf32, #tpu.memory_space<vmem>>) attributes {dimension_semantics = [#tpu.dimension_semantics<parallel>], iteration_bounds = array<i64: 1>, scalar_prefetch = 0 : i64, scratch_operands = 0 : i64, tpu.core_type = #tpu.core_type<tc>, window_params = [{transform_indices = @transform_0, window_bounds = array<i64: 8, 128>}, {pipeline_mode = #tpu.pipeline_mode<synchronous>, transform_indices = @transform_1, window_bounds = array<i64: 128, 128>}, {pipeline_mode = #tpu.pipeline_mode<synchronous>, transform_indices = @transform_2, window_bounds = array<i64: 1, 128>}, {pipeline_mode = #tpu.pipeline_mode<synchronous>, transform_indices = @transform_3, window_bounds = array<i64: 128, 128>}, {pipeline_mode = #tpu.pipeline_mode<synchronous>, transform_indices = @transform_4, window_bounds = array<i64: 1, 128>}, {transform_indices = @transform_5, window_bounds = array<i64: 8, 128>}]} {
    %c0 = arith.constant 0 : index
    %c0_0 = arith.constant 0 : index
    %0 = vector.load %arg1[%c0, %c0_0] : memref<8x128xf32, #tpu.memory_space<vmem>>, vector<8x128xf32>
    %c0_1 = arith.constant 0 : index
    %c0_2 = arith.constant 0 : index
    %1 = vector.load %arg2[%c0_1, %c0_2] : memref<128x128xf32, #tpu.memory_space<vmem>>, vector<128x128xf32>
    %cst = arith.constant dense<0.000000e+00> : vector<8x128xf32>
    %2 = tpu.matmul %0, %1, %cst {dimension_numbers = #tpu.dot_dimension_numbers<[1], [0], [0], [1], [0, 0, 1, 1], [], []>} : vector<8x128xf32>, vector<128x128xf32>, vector<8x128xf32> -> vector<8x128xf32>
    %c0_3 = arith.constant 0 : index
    %c0_4 = arith.constant 0 : index
    %3 = vector.load %arg3[%c0_3, %c0_4] : memref<1x128xf32, #tpu.memory_space<vmem>>, vector<1x128xf32>
    %4 = vector.broadcast %3 : vector<1x128xf32> to vector<8x128xf32>
    %5 = arith.addf %2, %4 : vector<8x128xf32>
    %cst_5 = arith.constant 0.000000e+00 : f32
    %6 = vector.broadcast %cst_5 : f32 to vector<8x128xf32>
    %7 = arith.maximumf %5, %6 : vector<8x128xf32>
    %c0_6 = arith.constant 0 : index
    %c0_7 = arith.constant 0 : index
    %8 = vector.load %arg4[%c0_6, %c0_7] : memref<128x128xf32, #tpu.memory_space<vmem>>, vector<128x128xf32>
    %cst_8 = arith.constant dense<0.000000e+00> : vector<8x128xf32>
    %9 = tpu.matmul %7, %8, %cst_8 {dimension_numbers = #tpu.dot_dimension_numbers<[1], [0], [0], [1], [0, 0, 1, 1], [], []>} : vector<8x128xf32>, vector<128x128xf32>, vector<8x128xf32> -> vector<8x128xf32>
    %c0_9 = arith.constant 0 : index
    %c0_10 = arith.constant 0 : index
    %10 = vector.load %arg5[%c0_9, %c0_10] : memref<1x128xf32, #tpu.memory_space<vmem>>, vector<1x128xf32>
    %11 = vector.broadcast %10 : vector<1x128xf32> to vector<8x128xf32>
    %12 = arith.addf %9, %11 : vector<8x128xf32>
    %13 = arith.addf %12, %0 : vector<8x128xf32>
    %c0_11 = arith.constant 0 : index
    %c0_12 = arith.constant 0 : index
    %14 = vector.load %arg6[%c0_11, %c0_12] : memref<8x128xf32, #tpu.memory_space<vmem>>, vector<8x128xf32>
    tpu.vector_store %arg6[%c0_11, %c0_12], %13 {strides = array<i32>} : memref<8x128xf32, #tpu.memory_space<vmem>>, vector<8x128xf32>,
    return
  }
  func.func @transform_0(%arg0: i32) -> (i32, i32) {
    %c0_i32 = arith.constant 0 : i32
    %c0_i32_0 = arith.constant 0 : i32
    return %arg0, %c0_i32 : i32, i32
  }
  func.func @transform_1(%arg0: i32) -> (i32, i32) {
    %c0_i32 = arith.constant 0 : i32
    %c0_i32_0 = arith.constant 0 : i32
    %c0_i32_1 = arith.constant 0 : i32
    return %c0_i32, %c0_i32_0 : i32, i32
  }
  func.func @transform_2(%arg0: i32) -> (i32, i32) {
    %c0_i32 = arith.constant 0 : i32
    %c0_i32_0 = arith.constant 0 : i32
    %c0_i32_1 = arith.constant 0 : i32
    return %c0_i32, %c0_i32_0 : i32, i32
  }
  func.func @transform_3(%arg0: i32) -> (i32, i32) {
    %c0_i32 = arith.constant 0 : i32
    %c0_i32_0 = arith.constant 0 : i32
    %c0_i32_1 = arith.constant 0 : i32
    return %c0_i32, %c0_i32_0 : i32, i32
  }
  func.func @transform_4(%arg0: i32) -> (i32, i32) {
    %c0_i32 = arith.constant 0 : i32
    %c0_i32_0 = arith.constant 0 : i32
    %c0_i32_1 = arith.constant 0 : i32
    return %c0_i32, %c0_i32_0 : i32, i32
  }
  func.func @transform_5(%arg0: i32) -> (i32, i32) {
    %c0_i32 = arith.constant 0 : i32
    %c0_i32_0 = arith.constant 0 : i32
    return %arg0, %c0_i32 : i32, i32
  }
}

</mosaic_0001>

<bundles_post_ra>
// kernel: pointwise_feed_forward.1
= control target key start
LH: loop header
LB: loop body
LE: loop exit
PB: predicated region body
PF: predicated region fallthrough
CT: control target
= control target key end

     0   :  { %10 = vsyncpa [#allocation3], 0  ;;  %s542_s0 = inlined_call_operand.vmem [shape: f32[8,128], index: 0, kind: input, shape index: {}]   ;;  %s543_s1 = inlined_call_operand.hbm [shape: f32[128,128], index: 1, kind: input, shape index: {}]   ;;  %s544_s2 = inlined_call_operand.vmem [shape: f32[1,128], index: 2, kind: input, shape index: {}]   ;;  %s545_s3 = inlined_call_operand.hbm [shape: f32[128,128], index: 3, kind: input, shape index: {}]   ;;  %s546_s4 = inlined_call_operand.vmem [shape: f32[1,128], index: 4, kind: input, shape index: {}]   ;;  %s547_s5 = inlined_call_operand.vmem [shape: f32[8,128], index: 5, kind: output, shape index: {}]  }
   0x1   :  { %11 = vsyncpa [#allocation5], 0  ;;  %s453_s18 = smov [#allocation2]   ;;  %s405_s22 = scalar_lea.hbm %s543_s1, 2048 }
   0x2   :  { %s19_s19 = sshll.u32 %s453_s18, 4  ;;  %p406_p0 = scmp.ne.s32.totalorder %s543_s1, %s405_s22  ;;  %s20_s19 = int_to_ptr.vmem [resolvable:$true] %s19_s19 }
   0x3   :  { %p409_p1 = scmp.lt.u32.totalorder %s405_s22, %s543_s1 }
   0x5   :  { %p411_p2 = pnand %p409_p1, %p406_p0 }
   0x7   :  { %414 = shalt.err (!%p411_p2)
}
   0x8   :  { %s415_s27 = scalar_lea.vmem %s20_s19, 2048  ;;  %p420_p4 = scmp.lt.s32.totalorder %s20_s19, %s20_s19 }
   0x9   :  { %p416_p3 = scmp.ne.s32.totalorder %s20_s19, %s415_s27  ;;  %p421_p5 = scmp.lt.s32.totalorder %s415_s27, %s415_s27 }
   0xb   :  { %p422_p6 = por %p421_p5, %p420_p4 }
   0xd   :  { %p423_p7 = pnand %p422_p6, %p416_p3 }
   0xf   :  { %426 = shalt.err (!%p423_p7)
}
  0x10   :  { %s454_s28 = smov 128   ;;  %s455_s29 = smov 8  }
  0x11   :  { %25 = dma.hbm_to_vmem [thread:$0]  %s543_s1, 2048, %s20_s19, [#allocation3], %s454_s28, %s454_s28, %s455_s29  }
  0x12   :  { %s456_s7 = smov [#allocation4]   ;;  %s427_s11 = scalar_lea.hbm %s545_s3, 2048 }
  0x13   :  { %s33_s8 = sshll.u32 %s456_s7, 4  ;;  %p428_p8 = scmp.ne.s32.totalorder %s545_s3, %s427_s11  ;;  %s34_s8 = int_to_ptr.vmem [resolvable:$true] %s33_s8 }
  0x14   :  { %p431_p9 = scmp.lt.u32.totalorder %s427_s11, %s545_s3 }
  0x16   :  { %p433_p10 = pnand %p431_p9, %p428_p8 }
  0x18   :  { %436 = shalt.err (!%p433_p10)
}
  0x19   :  { %s437_s16 = scalar_lea.vmem %s34_s8, 2048  ;;  %p442_p12 = scmp.lt.s32.totalorder %s34_s8, %s34_s8 }
  0x1a   :  { %p438_p11 = scmp.ne.s32.totalorder %s34_s8, %s437_s16  ;;  %p443_p13 = scmp.lt.s32.totalorder %s437_s16, %s437_s16 }
  0x1c   :  { %p444_p0 = por %p443_p13, %p442_p12 }
  0x1e   :  { %p445_p1 = pnand %p444_p0, %p438_p11 }
  0x20   :  { %448 = shalt.err (!%p445_p1)
}
  0x21   :  { %39 = dma.hbm_to_vmem [thread:$0]  %s545_s3, 2048, %s34_s8, [#allocation5], %s454_s28, %s454_s28, %s455_s29  }
  0x22   :  { %449 = dma.done.wait [#allocation3], 2048  }
  0x23   :  { %450 = vsyncadd [#allocation3], 4294965248 }
  0x24   :  { %451 = dma.done.wait [#allocation5], 2048  }
  0x25   :  { %452 = vsyncadd [#allocation5], 4294965248  ;;  %v457_v0 = vmov 0.0|0.0   ;;  %vm458_vm0 = vmmov 0   ;;  %v459_v1 = vmov 0.0   ;;  %v49_v2 = vld [vmem:[#allocation2] sm:$0xff] }
  0x26   :  { %350 = vmatprep.subr.bf16.mxu0 %v457_v0  ;;  %312 = vmatprep.mubr.msk.f32.mxu0 %vm458_vm0, %v459_v1  ;;  %v50_v3 = vld [vmem:[#allocation2 + $0x8] sm:$0xff]  ;;  %v51_v4 = vld [vmem:[#allocation2 + $0x10] sm:$0xff]  ;;  %v52_v6 = vld [vmem:[#allocation2 + $0x18] sm:$0xff] }
  0x27   :  { %374 = vmatprep.subr.bf16.mxu1 %v457_v0  ;;  %347 = vmatprep.mubr.msk.f32.mxu1 %vm458_vm0, %v459_v1  ;;  %v351_v5 = vpack.c.bf16 %v50_v3, %v49_v2  ;;  %v354_v7 = vpack.c.bf16 %v52_v6, %v51_v4  ;;  %v53_v8 = vld [vmem:[#allocation2 + $0x20] sm:$0xff]  ;;  %v54_v9 = vld [vmem:[#allocation2 + $0x28] sm:$0xff]  ;;  %v145_v12 = vld [vmem:[#allocation4 + $0x10] sm:$0xff] }
  0x28   :  { %v143_v10 = vld [vmem:[#allocation4] sm:$0xff]  ;;  %v144_v11 = vld [vmem:[#allocation4 + $0x8] sm:$0xff]  ;;  %v146_v13 = vld [vmem:[#allocation4 + $0x18] sm:$0xff]  ;;  %v357_v14 = vpack.c.bf16 %v54_v9, %v53_v8 }
  0x29   :  { %352 = vmatpush3.bf16.msra.mxu0 %v351_v5  ;;  %v375_v15 = vpack.c.bf16 %v144_v11, %v143_v10  ;;  %v55_v16 = vld [vmem:[#allocation2 + $0x30] sm:$0xff]  ;;  %v56_v17 = vld [vmem:[#allocation2 + $0x38] sm:$0xff]  ;;  %v378_v18 = vpack.c.bf16 %v146_v13, %v145_v12  ;;  %v147_v19 = vld [vmem:[#allocation4 + $0x20] sm:$0xff] }
  0x2a   :  { %353 = vmatprep.subr.bf16.mxu0 %v457_v0  ;;  %v148_v20 = vld [vmem:[#allocation4 + $0x28] sm:$0xff]  ;;  %v360_v21 = vpack.c.bf16 %v56_v17, %v55_v16  ;;  %v57_v22 = vld [vmem:[#allocation2 + $0x40] sm:$0xff]  ;;  %v149_v25 = vld [vmem:[#allocation4 + $0x30] sm:$0xff] }
  0x2b   :  { %376 = vmatpush3.bf16.msra.mxu1 %v375_v15  ;;  %v58_v23 = vld [vmem:[#allocation2 + $0x48] sm:$0xff]  ;;  %v381_v24 = vpack.c.bf16 %v148_v20, %v147_v19  ;;  %v150_v26 = vld [vmem:[#allocation4 + $0x38] sm:$0xff]  ;;  %v59_v28 = vld [vmem:[#allocation2 + $0x50] sm:$0xff] }
  0x2c   :  { %377 = vmatprep.subr.bf16.mxu1 %v457_v0  ;;  %v363_v27 = vpack.c.bf16 %v58_v23, %v57_v22  ;;  %v60_v29 = vld [vmem:[#allocation2 + $0x58] sm:$0xff]  ;;  %v384_v30 = vpack.c.bf16 %v150_v26, %v149_v25  ;;  %v151_v31 = vld [vmem:[#allocation4 + $0x40] sm:$0xff]  ;;  %v152_v32 = vld [vmem:[#allocation4 + $0x48] sm:$0xff] }
  0x2d   :  { %355 = vmatpush3.bf16.msra.mxu0 %v354_v7  ;;  %v366_v33 = vpack.c.bf16 %v60_v29, %v59_v28  ;;  %v61_v34 = vld [vmem:[#allocation2 + $0x60] sm:$0xff]  ;;  %v62_v35 = vld [vmem:[#allocation2 + $0x68] sm:$0xff]  ;;  %v387_v36 = vpack.c.bf16 %v152_v32, %v151_v31  ;;  %v153_v37 = vld [vmem:[#allocation4 + $0x50] sm:$0xff] }
  0x2e   :  { %356 = vmatprep.subr.bf16.mxu0 %v457_v0  ;;  %v154_v38 = vld [vmem:[#allocation4 + $0x58] sm:$0xff]  ;;  %v369_v39 = vpack.c.bf16 %v62_v35, %v61_v34  ;;  %v63_v40 = vld [vmem:[#allocation2 + $0x70] sm:$0xff]  ;;  %v155_v43 = vld [vmem:[#allocation4 + $0x60] sm:$0xff] }
  0x2f   :  { %379 = vmatpush3.bf16.msra.mxu1 %v378_v18  ;;  %v64_v41 = vld [vmem:[#allocation2 + $0x78] sm:$0xff]  ;;  %v390_v42 = vpack.c.bf16 %v154_v38, %v153_v37  ;;  %v156_v44 = vld [vmem:[#allocation4 + $0x68] sm:$0xff]  ;;  %v48_v47 = vld [vmem:[%s542_s0] sm:$0xff] }
  0x30   :  { %380 = vmatprep.subr.bf16.mxu1 %v457_v0  ;;  %v372_v45 = vpack.c.bf16 %v64_v41, %v63_v40  ;;  %v393_v46 = vpack.c.bf16 %v156_v44, %v155_v43  ;;  %v157_v48 = vld [vmem:[#allocation4 + $0x70] sm:$0xff]  ;;  %v158_v49 = vld [vmem:[#allocation4 + $0x78] sm:$0xff]  ;;  %v244_v51 = vld [vmem:[%s544_s2] ss:$0 sm:$0xff] }
  0x31   :  { %358 = vmatpush3.bf16.msra.mxu0 %v357_v14  ;;  %v396_v50 = vpack.c.bf16 %v158_v49, %v157_v48  ;;  %v245_v56 = vld [vmem:[%s546_s4] ss:$0 sm:$0xff] }
  0x32   :  { %359 = vmatprep.subr.bf16.mxu0 %v457_v0 }
  0x33   :  { %382 = vmatpush3.bf16.msra.mxu1 %v381_v24 }
  0x34   :  { %383 = vmatprep.subr.bf16.mxu1 %v457_v0 }
  0x35   :  { %361 = vmatpush3.bf16.msra.mxu0 %v360_v21 }
  0x36   :  { %362 = vmatprep.subr.bf16.mxu0 %v457_v0 }
  0x37   :  { %385 = vmatpush3.bf16.msra.mxu1 %v384_v30 }
  0x38   :  { %386 = vmatprep.subr.bf16.mxu1 %v457_v0 }
  0x39   :  { %364 = vmatpush3.bf16.msra.mxu0 %v363_v27 }
  0x3a   :  { %365 = vmatprep.subr.bf16.mxu0 %v457_v0 }
  0x3b   :  { %388 = vmatpush3.bf16.msra.mxu1 %v387_v36 }
  0x3c   :  { %389 = vmatprep.subr.bf16.mxu1 %v457_v0 }
  0x3d   :  { %367 = vmatpush3.bf16.msra.mxu0 %v366_v33 }
  0x3e   :  { %368 = vmatprep.subr.bf16.mxu0 %v457_v0 }
  0x3f   :  { %391 = vmatpush3.bf16.msra.mxu1 %v390_v42 }
  0x40   :  { %392 = vmatprep.subr.bf16.mxu1 %v457_v0 }
  0x41   :  { %370 = vmatpush3.bf16.msra.mxu0 %v369_v39 }
  0x42   :  { %371 = vmatprep.subr.bf16.mxu0 %v457_v0 }
  0x43   :  { %394 = vmatpush3.bf16.msra.mxu1 %v393_v46 }
  0x44   :  { %395 = vmatprep.subr.bf16.mxu1 %v457_v0 }
  0x45   :  { %373 = vmatpush3.bf16.msra.mxu0 %v372_v45 }
  0x47   :  { %397 = vmatpush3.bf16.msra.mxu1 %v396_v50 }
  0x48   :  { %313 = vmatmul.mubr.f32.vlgmr.msra.gmra.mrb[0].mxu0 %v48_v47 }
 0x11b   :  { %v138_v52 = vpop.f32.mrb[0].mxu0 }
 0x11c   :  { %v139_v53 = vadd.f32 %v244_v51, %v138_v52  ;;  %v314_v54 = vpop.f32.mrb[1].mxu0 }
 0x11e   :  { %v142_v55 = vmax.f32 %v139_v53, 0.0 }
 0x120   :  { %348 = vmatmul.mubr.f32.vlgmr.msra.gmra.mrb[0].mxu1 %v142_v55 }
 0x1f3   :  { %v232_v57 = vpop.f32.mrb[0].mxu1 }
 0x1f4   :  { %v233_v58 = vadd.f32 %v245_v56, %v232_v57  ;;  %v349_v59 = vpop.f32.mrb[1].mxu1 }
 0x1f6   :  { %v236_v60 = vadd.f32 %v233_v58, %v48_v47 }
 0x1f8   :  { %237 = vst [vmem:[%s547_s5] sm:$0xff] %v236_v60 }
 0x1f9   :  { %242 = vsyncpa [#allocation3], 1 }
 0x1fa   :  { %243 = vsyncpa [#allocation5], 1 }

</bundles_post_ra>
